<compile_context>
chip_gen: v6e
topology: v6e:2x2x1
jax: 0.10.0
libtpu: 0.0.40
codegen_flags: <defaults>
</compile_context>

<pallas_src>
import math

import jax
import jax.numpy as jnp
from jax.experimental import pallas as pl
from jax.experimental.pallas import tpu as pltpu


def sinusoidal_embed_kernel(time_ref, freqs_ref, out_ref):
    # time_ref : (bm, 1)          f32
    # freqs_ref: (1, half_dim)    f32  (resident across grid steps)
    # out_ref  : (bm, 2*half_dim) f32
    t = time_ref[...]                          # (bm, 1)
    f = freqs_ref[...]                         # (1, half_dim)
    args = t * f                               # VPU broadcast -> (bm, half_dim)
    out = jnp.concatenate([jnp.sin(args), jnp.cos(args)], axis=-1)  # EUP transcendentals
    out_ref[...] = out.astype(out_ref.dtype)


def _choose_bm(batch, out_dim):
    """Largest row tile (multiple of 8, <= 1024) whose double-buffered f32 working set
    (time tile + output tile) stays within ~12 MiB, safe under the default scoped-VMEM
    limit on v5e/v6e/v7x."""
    budget = 12 * 1024 * 1024                  # bytes for 2x (time + out) f32 tiles
    bm = budget // (2 * 4 * (out_dim + 1))
    bm = max(8, min(1024, (bm // 8) * 8))
    # Never exceed the (row-padded-to-8) batch.
    bm = min(bm, max(8, ((batch + 7) // 8) * 8))
    return bm


def sinusoidal_position_embeddings(time, dim, *, bm=None):
    """time: (B,) float array of timesteps. Returns (B, 2*(dim//2)) f32 embeddings."""
    B = time.shape[0]
    half_dim = dim // 2
    assert half_dim >= 2, "dim must be >= 4 (PyTorch divides by half_dim - 1)"
    out_dim = 2 * half_dim                     # == dim for even dim (torch.cat result)

    # Constant frequency table; tiny, computed once outside the kernel.
    scale = math.log(10000.0) / (half_dim - 1)
    freqs = jnp.exp(-scale * jnp.arange(half_dim, dtype=jnp.float32)).reshape(1, half_dim)

    if bm is None:
        bm = _choose_bm(B, out_dim)

    # Pad batch up to a multiple of bm so every grid step sees a full tile.
    Bp = ((B + bm - 1) // bm) * bm
    t2 = time.astype(jnp.float32).reshape(B, 1)
    if Bp != B:
        t2 = jnp.pad(t2, ((0, Bp - B), (0, 0)))

    grid = (Bp // bm,)
    out = pl.pallas_call(
        sinusoidal_embed_kernel,
        out_shape=jax.ShapeDtypeStruct((Bp, out_dim), jnp.float32),
        grid_spec=pltpu.PrefetchScalarGridSpec(
            num_scalar_prefetch=0,
            grid=grid,
            in_specs=[
                pl.BlockSpec((bm, 1), lambda i: (i, 0)),          # time tile
                pl.BlockSpec((1, half_dim), lambda i: (0, 0)),    # resident freqs
            ],
            out_specs=pl.BlockSpec((bm, out_dim), lambda i: (i, 0)),
        ),
        compiler_params=pltpu.CompilerParams(
            dimension_semantics=("parallel",),                    # shards across TCs on v7x
            vmem_limit_bytes=32 * 1024 * 1024,                    # explicit; safe on all gens
        ),
    )(t2, freqs)

    return out[:B]


if __name__ == "__main__":
    B, dim = 16, 128   # dim multiple of 128 -> lane-dense, unmasked output stores

    key = jax.random.PRNGKey(0)
    time = jax.random.uniform(key, (B,), dtype=jnp.float32, minval=0.0, maxval=1000.0)

    out = sinusoidal_position_embeddings(time, dim)
    jax.block_until_ready(out)

    # Pure-JAX reference (mirrors the PyTorch forward exactly).
    half_dim = dim // 2
    emb_scale = math.log(10000.0) / (half_dim - 1)
    freqs_ref = jnp.exp(jnp.arange(half_dim, dtype=jnp.float32) * -emb_scale)
    args_ref = time[:, None] * freqs_ref[None, :]
    ref = jnp.concatenate([jnp.sin(args_ref), jnp.cos(args_ref)], axis=-1)

    assert out.shape == (B, 2 * half_dim), f"bad shape {out.shape}"
    assert jnp.allclose(out, ref, atol=1e-5, rtol=1e-5), "mismatch vs reference"

    print("KERNEL_OK")
</pallas_src>

<mosaic_0001>
module attributes {stable_mosaic.version = 11 : i64} {
  func.func @sinusoidal_embed_kernel(%arg0: i32, %arg1: memref<16x1xf32, #tpu.memory_space<vmem>>, %arg2: memref<1x64xf32, #tpu.memory_space<vmem>>, %arg3: memref<16x128xf32, #tpu.memory_space<vmem>>) attributes {dimension_semantics = [#tpu.dimension_semantics<parallel>], iteration_bounds = array<i64: 1>, scalar_prefetch = 0 : i64, scratch_operands = 0 : i64, tpu.core_type = #tpu.core_type<tc>, window_params = [{transform_indices = @transform_0, window_bounds = array<i64: 16, 1>}, {pipeline_mode = #tpu.pipeline_mode<synchronous>, transform_indices = @transform_1, window_bounds = array<i64: 1, 64>}, {transform_indices = @transform_2, window_bounds = array<i64: 16, 128>}]} {
    %c0 = arith.constant 0 : index
    %c0_0 = arith.constant 0 : index
    %0 = vector.load %arg1[%c0, %c0_0] : memref<16x1xf32, #tpu.memory_space<vmem>>, vector<16x1xf32>
    %c0_1 = arith.constant 0 : index
    %c0_2 = arith.constant 0 : index
    %1 = vector.load %arg2[%c0_1, %c0_2] : memref<1x64xf32, #tpu.memory_space<vmem>>, vector<1x64xf32>
    %2 = vector.broadcast %0 : vector<16x1xf32> to vector<16x64xf32>
    %3 = vector.broadcast %1 : vector<1x64xf32> to vector<16x64xf32>
    %4 = arith.mulf %2, %3 : vector<16x64xf32>
    %5 = math.sin %4 : vector<16x64xf32>
    %6 = math.cos %4 : vector<16x64xf32>
    %7 = tpu.concatenate %5, %6 in 1 : vector<16x64xf32>, vector<16x64xf32> -> vector<16x128xf32>
    %c0_3 = arith.constant 0 : index
    %c0_4 = arith.constant 0 : index
    %8 = vector.load %arg3[%c0_3, %c0_4] : memref<16x128xf32, #tpu.memory_space<vmem>>, vector<16x128xf32>
    tpu.vector_store %arg3[%c0_3, %c0_4], %7 {strides = array<i32>} : memref<16x128xf32, #tpu.memory_space<vmem>>, vector<16x128xf32>,
    return
  }
  func.func @transform_0(%arg0: i32) -> (i32, i32) {
    %c0_i32 = arith.constant 0 : i32
    %c0_i32_0 = arith.constant 0 : i32
    return %arg0, %c0_i32 : i32, i32
  }
  func.func @transform_1(%arg0: i32) -> (i32, i32) {
    %c0_i32 = arith.constant 0 : i32
    %c0_i32_0 = arith.constant 0 : i32
    %c0_i32_1 = arith.constant 0 : i32
    return %c0_i32, %c0_i32_0 : i32, i32
  }
  func.func @transform_2(%arg0: i32) -> (i32, i32) {
    %c0_i32 = arith.constant 0 : i32
    %c0_i32_0 = arith.constant 0 : i32
    return %arg0, %c0_i32 : i32, i32
  }
}

</mosaic_0001>

<bundles_post_ra>
// kernel: tpu_custom_call.1
= control target key start
LH: loop header
LB: loop body
LE: loop exit
PB: predicated region body
PF: predicated region fallthrough
CT: control target
= control target key end

     0   :  { %v543_v1 = vmov 0   ;;  %s676_s0 = inlined_call_operand.vmem [shape: f32[16,1], index: 0, kind: input, shape index: {}]   ;;  %s677_s1 = inlined_call_operand.vmem [shape: f32[1,64], index: 1, kind: input, shape index: {}]   ;;  %s678_s2 = inlined_call_operand.hbm [shape: f32[16,128], index: 2, kind: output, shape index: {}]  }
   0x1   :  { %v12_v0 = vld [vmem:[%s676_s0] sm:$0xff]  ;;  %512 = vset.pattern.permute.xlu0 %v543_v1 }
   0x2   :  { %17 = vperm.xlu0 %512, %v12_v0  }
   0x3   :  { %7 = vsyncpa [#allocation3], 0  ;;  %v13_v2 = vld [vmem:[%s676_s0 + $0x8] sm:$0xff]  ;;  %v476_v3 = vld [vmem:[%s677_s1] ss:$0 sm:$0xff]  ;;  %s550_s0 = smov 64  }
   0x4   :  { %v544_v26 = vmov 2102212464   ;;  %v545_v28 = vmov 920167782   ;;  %v546_v32 = vmov 1326507024  }
   0x5   :  { %v547_v36 = vmov 683565275   ;;  %v548_v38 = vmov 2475754826   ;;  %v549_v40 = vmov 2131351028  }
   0x6   :  { %22 = vperm.xlu0 %512, %v13_v2   ;;  %s551_s1 = smov [#allocation2]  }
   0x7   :  { %s465_s15 = sshll.u32 %s551_s1, 4  ;;  %s466_s15 = int_to_ptr.vmem [resolvable:$true] %s465_s15 }
   0x8   :  { %s521_s16 = scalar_lea.vmem %s466_s15, 256  ;;  %p526_p1 = scmp.lt.s32.totalorder %s466_s15, %s466_s15 }
   0x9   :  { %p522_p0 = scmp.ne.s32.totalorder %s466_s15, %s521_s16  ;;  %p527_p2 = scmp.lt.s32.totalorder %s521_s16, %s521_s16 }
   0xb   :  { %p528_p3 = por %p527_p2, %p526_p1 }
   0xd   :  { %p529_p4 = pnand %p528_p3, %p522_p0 }
  0x7d   :  { %v18_v4 = vpop.permute.xlu0 %17 }
  0x7e   :  { %v578_v5 = vmul.f32 %v476_v3, %v18_v4 }
  0x80   :  { %v36_v6 = vand.u32 2139095040, %v578_v5  ;;  %v33_v13 = vand.u32 2147483647, %v578_v5 }
  0x81   :  { %v23_v7 = vpop.permute.xlu0 %22 }
  0x82   :  { %v37_v8 = vshrl.u32 %v36_v6, 23  ;;  %v581_v9 = vmul.f32 %v476_v3, %v23_v7  ;;  %v590_v18 = vand.u32 8388607, %v33_v13 }
  0x84   :  { %v477_v10 = vadd.s32 4294967169, %v37_v8  ;;  %v137_v11 = vand.u32 2147483647, %v581_v9  ;;  %v140_v12 = vand.u32 2139095040, %v581_v9  ;;  %v41_v25 = vor.u32 8388608, %v590_v18 }
  0x85   :  { %vm139_vm14 = vcmp.lt.s32.totalorder %v581_v9, 0 }
  0x86   :  { %v43_v14 = vadd.s32 1, %v477_v10  ;;  %v141_v15 = vshrl.u32 %v140_v12, 23  ;;  %v144_v16 = vand.u32 8388607, %v137_v11  ;;  %vm138_vm15 = vcmp.le.f32.partialorder %v137_v11, 0.7853982 }
  0x88   :  { %vm44_vm0 = vcmp.gt.s32.totalorder %v43_v14, 0  ;;  %v481_v17 = vadd.s32 4294967169, %v141_v15  ;;  %v145_v20 = vor.u32 8388608, %v144_v16 }
  0x89   :  { %v45_v19 = vsel %vm44_vm0, %v43_v14, 0  ;;  %vm35_vm0 = vcmp.lt.s32.totalorder %v578_v5, 0 }
  0x8a   :  { %v592_v21 = vshrl.u32 %v45_v19, 5  ;;  %v47_v22 = vand.u32 31, %v45_v19  ;;  %v147_v23 = vadd.s32 1, %v481_v17  ;;  %v597_v30 = vshll.u32 %v145_v20, 8 }
  0x8c   :  { %v594_v24 = vsub.s32 32, %v47_v22  ;;  %v59_v27 = vshll.u32 %v544_v26, %v47_v22  ;;  %v62_v29 = vshll.u32 %v545_v28, %v47_v22  ;;  %vm148_vm1 = vcmp.gt.s32.totalorder %v147_v23, 0 }
  0x8d   :  { %vm68_vm2 = vcmp.lt.s32.totalorder %v592_v21, 4  ;;  %v149_v34 = vsel %vm148_vm1, %v147_v23, 0  ;;  %v50_v37 = vshll.u32 %v547_v36, %v47_v22  ;;  %v53_v39 = vshll.u32 %v548_v38, %v47_v22 }
  0x8e   :  { %v60_v31 = vshrl.u32 %v545_v28, %v594_v24  ;;  %v63_v33 = vshrl.u32 %v546_v32, %v594_v24  ;;  %v151_v35 = vand.u32 31, %v149_v34  ;;  %v56_v41 = vshll.u32 %v549_v40, %v47_v22 }
  0x8f   :  { %v150_v43 = vshrl.u32 %v149_v34, 5  ;;  %v51_v44 = vshrl.u32 %v548_v38, %v594_v24  ;;  %v54_v45 = vshrl.u32 %v549_v40, %v594_v24  ;;  %v57_v49 = vshrl.u32 %v544_v26, %v594_v24 }
  0x90   :  { %v61_v42 = vor.u32 %v60_v31, %v59_v27  ;;  %v64_v46 = vor.u32 %v63_v33, %v62_v29  ;;  %v152_v47 = vsub.s32 32, %v151_v35  ;;  %v154_v48 = vshll.u32 %v547_v36, %v151_v35 }
  0x91   :  { %v157_v51 = vshll.u32 %v548_v38, %v151_v35  ;;  %v160_v52 = vshll.u32 %v549_v40, %v151_v35  ;;  %v163_v53 = vshll.u32 %v544_v26, %v151_v35  ;;  %v166_v57 = vshll.u32 %v545_v28, %v151_v35 }
  0x92   :  { %v74_v50 = vsel %vm68_vm2, %v61_v42, 920167782  ;;  %v155_v54 = vshrl.u32 %v548_v38, %v152_v47  ;;  %v158_v55 = vshrl.u32 %v549_v40, %v152_v47  ;;  %v161_v56 = vshrl.u32 %v544_v26, %v152_v47 }
  0x93   :  { %vm65_vm3 = vcmp.lt.s32.totalorder %v592_v21, 1  ;;  %v153_v58 = vshrl.u32 %v547_v36, %v152_v47  ;;  %v164_v59 = vshrl.u32 %v545_v28, %v152_v47  ;;  %v167_v60 = vshrl.u32 %v546_v32, %v152_v47 }
  0x94   :  { %vm169_vm4 = vcmp.lt.s32.totalorder %v150_v43, 1  ;;  %v156_v61 = vor.u32 %v155_v54, %v154_v48  ;;  %v159_v62 = vor.u32 %v158_v55, %v157_v51  ;;  %v162_v63 = vor.u32 %v161_v56, %v160_v52 }
  0x95   :  { %vm171_vm5 = vcmp.lt.s32.totalorder %v150_v43, 3  ;;  %v165_v0 = vor.u32 %v164_v59, %v163_v53  ;;  %v168_v1 = vor.u32 %v167_v60, %v166_v57  ;;  %vm172_vm6 = vcmp.lt.s32.totalorder %v150_v43, 4 }
  0x96   :  { %v52_v2 = vor.u32 %v51_v44, %v50_v37  ;;  %v173_v3 = vsel %vm169_vm4, %v153_v58, %v156_v61  ;;  %v174_v4 = vsel %vm172_vm6, %v162_v63, 2102212464  ;;  %v177_v6 = vsel %vm169_vm4, %v156_v61, %v159_v62 }
  0x97   :  { %v181_v7 = vsel %vm169_vm4, %v159_v62, %v162_v63  ;;  %v175_v8 = vsel %vm171_vm5, %v159_v62, %v174_v4  ;;  %v178_v10 = vsel %vm172_vm6, %v165_v0, 920167782  ;;  %v182_v12 = vsel %vm172_vm6, %v168_v1, 1326507024 }
  0x98   :  { %v55_v14 = vor.u32 %v54_v45, %v53_v39  ;;  %vm170_vm7 = vcmp.lt.s32.totalorder %v150_v43, 2  ;;  %v179_v15 = vsel %vm171_vm5, %v162_v63, %v178_v10  ;;  %v183_v16 = vsel %vm171_vm5, %v165_v0, %v182_v12 }
  0x99   :  { %v58_v17 = vor.u32 %v57_v49, %v56_v41  ;;  %v78_v19 = vsel %vm68_vm2, %v64_v46, 1326507024  ;;  %v176_v20 = vsel %vm170_vm7, %v173_v3, %v175_v8  ;;  %v180_v22 = vsel %vm170_vm7, %v177_v6, %v179_v15 }
  0x9a   :  { %v184_v23 = vsel %vm170_vm7, %v181_v7, %v183_v16  ;;  %v615_v28 = vmul.u32.u64.low %v597_v30, %v180_v22  ;;  %v616_v29 = vmul.u32.u64.high %v597_v30, %v180_v22, %v615_v28  ;;  %v49_v31 = vshrl.u32 %v547_v36, %v594_v24 }
  0x9b   :  { %v611_v26 = vmul.u32.u64.low %v597_v30, %v184_v23  ;;  %v612_v27 = vmul.u32.u64.high %v597_v30, %v184_v23, %v611_v26  ;;  %vm67_vm8 = vcmp.lt.s32.totalorder %v592_v21, 3  ;;  %v70_v32 = vsel %vm68_vm2, %v58_v17, 2102212464 }
  0x9c   :  { %v73_v33 = vsel %vm65_vm3, %v52_v2, %v55_v14  ;;  %vm66_vm9 = vcmp.lt.s32.totalorder %v592_v21, 2  ;;  %v75_v34 = vsel %vm67_vm8, %v58_v17, %v74_v50  ;;  %v77_v35 = vsel %vm65_vm3, %v55_v14, %v58_v17 }
  0x9d   :  { %v79_v37 = vsel %vm67_vm8, %v61_v42, %v78_v19  ;;  %v192_v24 = vmul.u32 %v597_v30, %v176_v20  ;;  %v76_v36 = vsel %vm66_vm9, %v73_v33, %v75_v34  ;;  %v81_v39 = vshll.u32 %v41_v25, 8 }
  0x9e   :  { %v80_v38 = vsel %vm66_vm9, %v77_v35, %v79_v37  ;;  %vm194_vm10 = vc.u32 %v612_v27, %v615_v28  ;;  %v195_v40 = vadd.s32 1, %v616_v29  ;;  %v69_v41 = vsel %vm65_vm3, %v49_v31, %v52_v2 }
  0x9f   :  { %v71_v42 = vsel %vm67_vm8, %v55_v14, %v70_v32  ;;  %v644_v30 = vmul.u32.u64.low %v81_v39, %v80_v38  ;;  %v645_v43 = vmul.u32.u64.high %v81_v39, %v80_v38, %v644_v30  ;;  %v193_v2 = vadd.s32 %v615_v28, %v612_v27 }
  0xa0   :  { %v647_v44 = vmul.u32.u64.low %v81_v39, %v76_v36  ;;  %v648_v45 = vmul.u32.u64.high %v81_v39, %v76_v36, %v647_v44  ;;  %v196_v46 = vsel %vm194_vm10, %v195_v40, %v616_v29  ;;  %v72_v25 = vsel %vm66_vm9, %v69_v41, %v71_v42 }
  0xa1   :  { %v197_v18 = vadd.s32 %v196_v46, %v192_v24  ;;  %v88_v49 = vmul.u32 %v81_v39, %v72_v25  ;;  %vm34_vm1 = vcmp.le.f32.partialorder %v33_v13, 0.7853982  ;;  %vm229_vm5 = vweird.f32 %v581_v9 }
  0xa2   :  { %vm90_vm11 = vc.u32 %v645_v43, %v647_v44  ;;  %v91_v48 = vadd.s32 1, %v648_v45  ;;  %v89_v16 = vadd.s32 %v647_v44, %v645_v43 }
  0xa3   :  { %v198_v47 = vadd.s32 536870912, %v197_v18 }
  0xa4   :  { %v92_v51 = vsel %vm90_vm11, %v91_v48, %v648_v45 }
  0xa5   :  { %v199_v50 = vshrl.u32 %v198_v47, 30  ;;  %v93_v52 = vadd.s32 %v92_v51, %v88_v49 }
  0xa7   :  { %v200_v53 = vshll.u32 %v199_v50, 30  ;;  %v94_v54 = vadd.s32 536870912, %v93_v52  ;;  %v223_v24 = vsub.s32 4, %v199_v50 }
  0xa9   :  { %v201_v55 = vsub.s32 %v197_v18, %v200_v53  ;;  %v95_v56 = vshrl.u32 %v94_v54, 30  ;;  %v224_v41 = vsel %vm139_vm14, %v223_v24, %v199_v50 }
  0xaa   :  { %v226_v44 = vsel %vm138_vm15, 0, %v224_v41 }
  0xab   :  { %v203_v57 = vsub.s32 0, %v201_v55  ;;  %v96_v58 = vshll.u32 %v95_v56, 30  ;;  %v119_v42 = vsub.s32 4, %v95_v56  ;;  %v230_v11 = vadd.s32 3, %v226_v44 }
  0xac   :  { %v437_v50 = vand.u32 3, %v226_v44 }
  0xad   :  { %v482_v59 = vmin.u32 %v203_v57, %v201_v55  ;;  %v97_v60 = vsub.s32 %v93_v52, %v96_v58  ;;  %v120_v45 = vsel %vm35_vm0, %v119_v42, %v95_v56  ;;  %v231_v18 = vand.u32 3, %v230_v11 }
  0xae   :  { %v122_v46 = vsel %vm34_vm1, 0, %v120_v45  ;;  %vm438_vm6 = vcmp.lt.s32.totalorder %v437_v50, 2  ;;  %vm439_vm7 = vcmp.eq.s32.totalorder %v437_v50, 0  ;;  %vm442_vm9 = vcmp.eq.s32.totalorder %v437_v50, 2 }
  0xaf   :  { %v205_v21 = vclz %v482_v59  ;;  %v99_v61 = vsub.s32 0, %v97_v60  ;;  %v126_v25 = vadd.s32 3, %v122_v46  ;;  %v334_v51 = vand.u32 3, %v122_v46 }
  0xb0   :  { %vm236_vm2 = vcmp.eq.s32.totalorder %v231_v18, 2  ;;  %vm233_vm3 = vcmp.eq.s32.totalorder %v231_v18, 0  ;;  %vm232_vm4 = vcmp.lt.s32.totalorder %v231_v18, 2 }
  0xb1   :  { %v483_v62 = vadd.s32 4294967294, %v205_v21  ;;  %v478_v63 = vmin.u32 %v99_v61, %v97_v60  ;;  %v127_v53 = vand.u32 3, %v126_v25  ;;  %vm339_vm8 = vcmp.eq.s32.totalorder %v334_v51, 2 }
  0xb3   :  { %vm484_vm12 = vcmp.lt.s32.totalorder %v483_v62, 0  ;;  %v101_v1 = vclz %v478_v63  ;;  %vm132_vm10 = vcmp.eq.s32.totalorder %v127_v53, 2  ;;  %vm129_vm11 = vcmp.eq.s32.totalorder %v127_v53, 0 }
  0xb4   :  { %v208_v0 = vsel %vm484_vm12, 0, %v483_v62  ;;  %vm336_vm12 = vcmp.eq.s32.totalorder %v334_v51, 0 }
  0xb5   :  { %v209_v3 = vsub.s32 32, %v208_v0  ;;  %v213_v4 = vsub.s32 4294967266, %v208_v0  ;;  %v479_v6 = vadd.s32 4294967294, %v101_v1  ;;  %v210_v7 = vshll.u32 %v201_v55, %v208_v0 }
  0xb7   :  { %v211_v8 = vshrl.u32 %v193_v2, %v209_v3  ;;  %v214_v10 = vadd.s32 127, %v213_v4  ;;  %vm480_vm13 = vcmp.lt.s32.totalorder %v479_v6, 0 }
  0xb8   :  { %v104_v15 = vsel %vm480_vm13, 0, %v479_v6  ;;  %vm128_vm13 = vcmp.lt.s32.totalorder %v127_v53, 2 }
  0xb9   :  { %v212_v12 = vor.u32 %v211_v8, %v210_v7  ;;  %v215_v14 = vshll.u32 %v214_v10, 23  ;;  %v105_v17 = vsub.s32 32, %v104_v15  ;;  %v109_v19 = vsub.s32 4294967266, %v104_v15 }
  0xba   :  { %v106_v22 = vshll.u32 %v97_v60, %v104_v15 }
  0xbb   :  { %v216_v20 = vor.u32 4788187, %v215_v14  ;;  %v107_v23 = vshrl.u32 %v89_v16, %v105_v17  ;;  %v110_v26 = vadd.s32 127, %v109_v19  ;;  %v219_v27 = vcvt.s32.f32 %v212_v12 }
  0xbd   :  { %v217_v29 = vand.u32 2147483647, %v216_v20  ;;  %v108_v28 = vor.u32 %v107_v23, %v106_v22  ;;  %v111_v31 = vshll.u32 %v110_v26, 23 }
  0xbf   :  { %v220_v32 = vmul.f32 %v219_v27, %v217_v29  ;;  %v112_v33 = vor.u32 4788187, %v111_v31  ;;  %v115_v37 = vcvt.s32.f32 %v108_v28 }
  0xc1   :  { %v221_v34 = vxor.u32 2147483648, %v220_v32  ;;  %v113_v35 = vand.u32 2147483647, %v112_v33 }
  0xc3   :  { %v222_v36 = vsel %vm139_vm14, %v221_v34, %v220_v32  ;;  %v116_v38 = vmul.f32 %v115_v37, %v113_v35  ;;  %vm335_vm14 = vcmp.lt.s32.totalorder %v334_v51, 2 }
  0xc4   :  { %v225_v39 = vsel %vm138_vm15, %v581_v9, %v222_v36  ;;  %vm125_vm15 = vweird.f32 %v578_v5 }
  0xc5   :  { %513 = vcosq.f32 %v225_v39  ;;  %v117_v40 = vxor.u32 2147483648, %v116_v38 }
  0xc6   :  { %515 = vsinq.f32 %v225_v39 }
  0xc7   :  { %v118_v30 = vsel %vm35_vm0, %v117_v40, %v116_v38  ;;  %vm455_vm0 = vcmask 523264  }
  0xc8   :  { %v121_v43 = vsel %vm34_vm1, %v578_v5, %v118_v30 }
  0xc9   :  { %517 = vcosq.f32 %v121_v43 }
  0xca   :  { %519 = vsinq.f32 %v121_v43 }
  0xd2   :  { %v514_v47 = vpop.eup %513 }
  0xd3   :  { %v516_v48 = vpop.eup %515  ;;  %v237_v49 = vxor.u32 2147483648, %v514_v47 }
  0xd4   :  { %v234_v52 = vxor.u32 2147483648, %v516_v48 }
  0xd5   :  { %v238_v13 = vsel %vm236_vm2, %v237_v49, %v516_v48  ;;  %v444_v61 = vsel %vm442_vm9, %v237_v49, %v516_v48 }
  0xd6   :  { %v235_v54 = vsel %vm233_vm3, %v514_v47, %v234_v52  ;;  %v518_v55 = vpop.eup %517  ;;  %v441_v21 = vsel %vm439_vm7, %v514_v47, %v234_v52 }
  0xd7   :  { %v239_v56 = vsel %vm232_vm4, %v235_v54, %v238_v13  ;;  %v520_v57 = vpop.eup %519  ;;  %v133_v58 = vxor.u32 2147483648, %v518_v55  ;;  %v445_v4 = vsel %vm438_vm6, %v441_v21, %v444_v61 }
  0xd8   :  { %v240_v59 = vsel %vm229_vm5, nan, %v239_v56  ;;  %v130_v60 = vxor.u32 2147483648, %v520_v57  ;;  %v446_v8 = vsel %vm229_vm5, nan, %v445_v4 }
  0xd9   :  { %v341_v62 = vsel %vm339_vm8, %v133_v58, %v520_v57  ;;  %v134_v63 = vsel %vm132_vm10, %v133_v58, %v520_v57 }
  0xda   :  { %v338_v0 = vsel %vm336_vm12, %v518_v55, %v130_v60  ;;  %v131_v1 = vsel %vm129_vm11, %v518_v55, %v130_v60 }
  0xdb   :  { %v342_v2 = vsel %vm335_vm14, %v338_v0, %v341_v62  ;;  %v135_v3 = vsel %vm128_vm13, %v131_v1, %v134_v63 }
  0xdc   :  { %v343_v6 = vsel %vm125_vm15, nan, %v342_v2  ;;  %v136_v7 = vsel %vm125_vm15, nan, %v135_v3 }
  0xdd   :  { %449 = vrot.lane.b32.xlu1 %v343_v6, %s550_s0 }
  0xe1   :  { %451 = vrot.lane.b32.xlu1 %v446_v8, %s550_s0 }
 0x14f   :  { %v450_v10 = vpop.permute.xlu1 %449 }
 0x150   :  { %v456_v12 = vsel %vm455_vm0, %v136_v7, %v450_v10 }
 0x151   :  { %458 = vst [vmem:[#allocation2] sm:$0xff] %v456_v12 }
 0x153   :  { %v452_v14 = vpop.permute.xlu1 %451 }
 0x154   :  { %v457_v5 = vsel %vm455_vm0, %v240_v59, %v452_v14 }
 0x155   :  { %459 = vst [vmem:[#allocation2 + $0x8] sm:$0xff] %v457_v5 }
 0x156   :  { %532 = shalt.err (!%p529_p4)
}
 0x157   :  { %s552_s17 = smov 128   ;;  %s553_s18 = smov 8  }
 0x158   :  { %471 = dma.vmem_to_hbm [thread:$0]  %s466_s15, 256, %s678_s2, [#allocation3], %s552_s17, %s552_s17, %s553_s18  }
 0x159   :  { %541 = dma.done.wait [#allocation3], 256  }
 0x15a   :  { %542 = vsyncadd [#allocation3], 4294967040 }
 0x15b   :  { %475 = vsyncpa [#allocation3], 1 }

</bundles_post_ra>
